<compile_context>
chip_gen: v6e
topology: v6e:2x2x1
jax: 0.10.0
libtpu: 0.0.40
codegen_flags: <defaults>
</compile_context>

<pallas_src>
import functools

import numpy as np
import jax
import jax.numpy as jnp
from jax.experimental import pallas as pl
from jax.experimental.pallas import tpu as pltpu


def _tpu_budgets():
    """(vmem_limit_bytes, max elements of a streamed bf16 weight block)."""
    try:
        cap = pltpu.get_tpu_info().vmem_capacity_bytes
    except Exception:
        cap = 64 * 1024 * 1024
    if cap <= 64 * 1024 * 1024:
        # v7x-class: 64 MiB physical VMEM -> keep the weight double-buffer <= ~12 MB.
        return 48 * 1024 * 1024, 3 * 1024 * 1024
    # v5e / v6e: 128 MiB physical VMEM.
    return 96 * 1024 * 1024, 4 * 1024 * 1024


_VMEM_LIMIT, _W_BLOCK_ELEMS = _tpu_budgets()
_POOL_TILE_BUDGET = 2 * 1024 * 1024   # bytes of the dominant pool/unpool tile
_M_TILE_CAP = 4096                    # max GEMM rows per tile


# ----------------------------------------------------------------------------
# Shared GEMM kernel: out = act((x @ w) * scale + shift), f32 accumulation.
# Single (M,N) grid -- the whole K reduction is resident, so there is no
# accumulator scratch and no K grid axis.
# ----------------------------------------------------------------------------
def _gemm_affine_kernel(x_ref, w_ref, s_ref, b_ref, o_ref, *, relu):
    r = jnp.dot(x_ref[...], w_ref[...], preferred_element_type=jnp.float32)
    r = r * s_ref[...] + b_ref[...]
    if relu:
        r = jnp.maximum(r, 0.0)
    o_ref[...] = r.astype(o_ref.dtype)


def _pick_tn(N, K):
    """Weight-block column width: <= budget, and >=2 blocks when N >= 256 so both
    v7x TensorCores get work (weight streaming)."""
    if N <= 128:
        return N
    cap = max(128, min(N // 2, _W_BLOCK_ELEMS // K))
    cap = (cap // 128) * 128
    d = cap
    while d >= 128:
        if N % d == 0:
            return d
        d -= 128
    return N


def _pick_tm(M, n_blocks_n):
    """Row-tile: split M in two only when N has a single block (keeps the weight
    block resident, no duplicated weight DMA on 1-TC chips)."""
    cap = _M_TILE_CAP
    if n_blocks_n == 1 and M >= 16:
        cap = min(cap, max(8, M // 2))
    if M <= cap:
        return M
    for d in range(cap, 7, -1):
        if M % d == 0 and d % 8 == 0:
            return d
    return M


def gemm_affine(x, w, scale, shift, relu=False, out_dtype=jnp.float32):
    """x: (M,K), w: (K,N). Inputs cast to bf16, f32 accumulation, fused affine/ReLU."""
    x = x.astype(jnp.bfloat16)
    w = w.astype(jnp.bfloat16)
    M, K = x.shape
    K2, N = w.shape
    assert K == K2
    tn = _pick_tn(N, K)
    tm = _pick_tm(M, N // tn)
    return pl.pallas_call(
        functools.partial(_gemm_affine_kernel, relu=relu),
        out_shape=jax.ShapeDtypeStruct((M, N), out_dtype),
        grid_spec=pltpu.PrefetchScalarGridSpec(
            num_scalar_prefetch=0,
            grid=(M // tm, N // tn),
            in_specs=[
                pl.BlockSpec((tm, K), lambda i, j: (i, 0)),
                pl.BlockSpec((K, tn), lambda i, j: (0, j)),
                pl.BlockSpec((1, tn), lambda i, j: (0, j)),
                pl.BlockSpec((1, tn), lambda i, j: (0, j)),
            ],
            out_specs=pl.BlockSpec((tm, tn), lambda i, j: (i, j)),
        ),
        compiler_params=pltpu.CompilerParams(
            dimension_semantics=("parallel", "parallel"),
            vmem_limit_bytes=_VMEM_LIMIT),
    )(x, w,
      scale.reshape(1, N).astype(jnp.float32),
      shift.reshape(1, N).astype(jnp.float32))


# ----------------------------------------------------------------------------
# 3x3 "same" conv as im2col + GEMM (for all layers at <=24x24 spatial)
# ----------------------------------------------------------------------------
def _im2col(x):
    """x: (B,H,W,C) -> (B,H,W,9*C); tap order (dy,dx) row-major, 'same' padding."""
    B, H, W, C = x.shape
    xp = jnp.pad(x, ((0, 0), (1, 1), (1, 1), (0, 0)))
    taps = [xp[:, dy:dy + H, dx:dx + W, :] for dy in range(3) for dx in range(3)]
    return jnp.concatenate(taps, axis=-1)


def _to_windows(x, k):
    """(B,H,W,C) -> (B, Hp*Wp, k*k, C) non-overlapping kxk windows (XLA transpose
    over only C channels -- used on conv outputs, never on the 9*Cin im2col)."""
    B, H, W, C = x.shape
    Hp, Wp = H // k, W // k
    xw = x.reshape(B, Hp, k, Wp, k, C).transpose(0, 1, 3, 2, 4, 5)
    return xw.reshape(B, Hp * Wp, k * k, C)


def _from_windows(xw, k, Hp, Wp):
    B, _, _, C = xw.shape
    x = xw.reshape(B, Hp, Wp, k, k, C).transpose(0, 1, 3, 2, 4, 5)
    return x.reshape(B, Hp * k, Wp * k, C)


def conv3x3_gemm(x, w_flat, scale, shift, relu=False, pool_k=None,
                 out_dtype=jnp.bfloat16):
    """3x3 'same' conv + folded BN affine (+optional ReLU) as one GEMM.

    x: (B,H,W,Cin); w_flat: (9*Cin, Cout) (HWIO flattened).
    pool_k is only used for conv1 (9*Cin=27 < Cout): the (cheap) im2col input is
    window-ordered so the GEMM output comes out in pool-window order
    (B, Hp*Wp, k*k, Cout).  Otherwise returns row-major (B, H, W, Cout).
    """
    B, H, W, C = x.shape
    Cout = w_flat.shape[1]
    p = _im2col(x.astype(jnp.bfloat16))                        # (B,H,W,9C)
    if pool_k is not None:
        k = pool_k
        Hp, Wp = H // k, W // k
        p = p.reshape(B, Hp, k, Wp, k, 9 * C).transpose(0, 1, 3, 2, 4, 5)
    p = p.reshape(B * H * W, 9 * C)
    out = gemm_affine(p, w_flat, scale, shift, relu=relu, out_dtype=out_dtype)
    if pool_k is not None:
        return out.reshape(B, Hp * Wp, pool_k * pool_k, Cout)
    return out.reshape(B, H, W, Cout)


# ----------------------------------------------------------------------------
# Spatial 3x3 conv kernel (used only for deconv1: 96x96, Cin=64, Cout=3)
# 9 taps accumulate into a VMEM scratch accumulator; bf16 inputs, f32 accumulate.
# ----------------------------------------------------------------------------
def _conv3x3_spatial_kernel(x_ref, w_ref, s_ref, b_ref, o_ref, acc_ref, *, th, relu):
    # x_ref : (1, H+2, W+2, Cin) bf16 -- full padded image for this batch element
    # w_ref : (9*Cin, Cout) bf16
    # o_ref : (1, th*W, Cout)
    W = x_ref.shape[2] - 2
    Cin = x_ref.shape[3]
    h0 = pl.multiple_of(pl.program_id(1) * th, th)
    acc_ref[...] = jnp.zeros_like(acc_ref)
    for t in range(9):
        dy, dx = t // 3, t % 3
        patch = x_ref[0, pl.ds(h0 + dy, th), dx:dx + W, :]        # (th, W, Cin)
        acc_ref[...] += jnp.dot(patch.reshape(th * W, Cin),
                                w_ref[t * Cin:(t + 1) * Cin, :],
                                preferred_element_type=jnp.float32)
    r = acc_ref[...] * s_ref[0] + b_ref[0]
    if relu:
        r = jnp.maximum(r, 0.0)
    o_ref[0] = r.astype(o_ref.dtype)


def conv3x3_spatial(x, w_flat, scale, shift, relu=False, th=32,
                    out_dtype=jnp.float32):
    """3x3 'same' conv + affine for large spatial maps with small Cout (row-tiled)."""
    B, H, W, Cin = x.shape
    Cout = w_flat.shape[1]
    x = x.astype(jnp.bfloat16)
    w_flat = w_flat.astype(jnp.bfloat16)
    xp = jnp.pad(x, ((0, 0), (1, 1), (1, 1), (0, 0)))
    while th > 1 and H % th:
        th //= 2
    out = pl.pallas_call(
        functools.partial(_conv3x3_spatial_kernel, th=th, relu=relu),
        out_shape=jax.ShapeDtypeStruct((B, H * W, Cout), out_dtype),
        grid_spec=pltpu.PrefetchScalarGridSpec(
            num_scalar_prefetch=0,
            grid=(B, H // th),
            in_specs=[
                pl.BlockSpec((1, H + 2, W + 2, Cin), lambda b, h: (b, 0, 0, 0)),
                pl.BlockSpec((9 * Cin, Cout), lambda b, h: (0, 0)),
                pl.BlockSpec((1, Cout), lambda b, h: (0, 0)),
                pl.BlockSpec((1, Cout), lambda b, h: (0, 0)),
            ],
            out_specs=pl.BlockSpec((1, th * W, Cout), lambda b, h: (b, h, 0)),
            scratch_shapes=[pltpu.VMEM((th * W, Cout), jnp.float32)],
        ),
        compiler_params=pltpu.CompilerParams(
            dimension_semantics=("parallel", "parallel"),
            vmem_limit_bytes=_VMEM_LIMIT),
    )(xp, w_flat,
      scale.reshape(1, Cout).astype(jnp.float32),
      shift.reshape(1, Cout).astype(jnp.float32))
    return out.reshape(B, H, W, Cout)


# ----------------------------------------------------------------------------
# MaxPool (kxk, stride k) on window-ordered input, ReLU fused; MaxUnpool scatter
# Indices are int8 (window position 0..k*k-1 <= 15).
# ----------------------------------------------------------------------------
def _pick_hw_tile(HW, KK, C, itembytes):
    t = HW
    while (t % 2 == 0 and (t // 2) % 32 == 0
           and t * KK * C * itembytes > _POOL_TILE_BUDGET):
        t //= 2
    return t


def _maxpool_kernel(x_ref, o_ref, i_ref):
    # x_ref: (1, thw, KK, C)  ->  o_ref (post-ReLU max), i_ref (argmax int8): (1, thw, C)
    x = x_ref[0].astype(jnp.float32)
    kk = x.shape[1]
    m = jnp.max(x, axis=1)                                       # pre-ReLU window max
    pos = jax.lax.broadcasted_iota(jnp.int32, x.shape, 1)
    hit = x >= m[:, None, :]
    i_ref[0] = jnp.min(jnp.where(hit, pos, kk), axis=1).astype(jnp.int8)
    o_ref[0] = jnp.maximum(m, 0.0).astype(o_ref.dtype)           # model ReLUs after pool


def maxpool_relu_windowed(xw, k, Hp, Wp):
    """xw: (B, Hp*Wp, k*k, C) windowed activations.
    Returns (relu(pooled) as (B,Hp,Wp,C), argmax-in-window as (B,Hp*Wp,C) int8)."""
    B, HW, KK, C = xw.shape
    thw = _pick_hw_tile(HW, KK, C, xw.dtype.itemsize)
    pooled, idx = pl.pallas_call(
        _maxpool_kernel,
        out_shape=(jax.ShapeDtypeStruct((B, HW, C), xw.dtype),
                   jax.ShapeDtypeStruct((B, HW, C), jnp.int8)),
        grid_spec=pltpu.PrefetchScalarGridSpec(
            num_scalar_prefetch=0,
            grid=(B, HW // thw),
            in_specs=[pl.BlockSpec((1, thw, KK, C), lambda b, h: (b, h, 0, 0))],
            out_specs=(pl.BlockSpec((1, thw, C), lambda b, h: (b, h, 0)),
                       pl.BlockSpec((1, thw, C), lambda b, h: (b, h, 0))),
        ),
        compiler_params=pltpu.CompilerParams(
            dimension_semantics=("parallel", "parallel"),
            vmem_limit_bytes=_VMEM_LIMIT),
    )(xw)
    return pooled.reshape(B, Hp, Wp, C), idx


def _unpool_kernel(v_ref, i_ref, o_ref):
    # v_ref: (1, thw, C), i_ref: (1, thw, C) int8  ->  o_ref: (1, thw, KK, C)
    shape = o_ref.shape[1:]
    v = v_ref[0].astype(jnp.float32)[:, None, :]
    idx = i_ref[0].astype(jnp.int32)[:, None, :]
    pos = jax.lax.broadcasted_iota(jnp.int32, shape, 1)
    o_ref[0] = jnp.where(pos == idx, v, 0.0).astype(o_ref.dtype)


def maxunpool(v, idx, k):
    """v: (B,Hp,Wp,C), idx: (B,Hp*Wp,C) int8. Returns (B, Hp*k, Wp*k, C)."""
    B, Hp, Wp, C = v.shape
    HW, KK = Hp * Wp, k * k
    vw = v.reshape(B, HW, C)
    thw = _pick_hw_tile(HW, KK, C, v.dtype.itemsize)
    out = pl.pallas_call(
        _unpool_kernel,
        out_shape=jax.ShapeDtypeStruct((B, HW, KK, C), v.dtype),
        grid_spec=pltpu.PrefetchScalarGridSpec(
            num_scalar_prefetch=0,
            grid=(B, HW // thw),
            in_specs=[pl.BlockSpec((1, thw, C), lambda b, h: (b, h, 0)),
                      pl.BlockSpec((1, thw, C), lambda b, h: (b, h, 0))],
            out_specs=pl.BlockSpec((1, thw, KK, C), lambda b, h: (b, h, 0, 0)),
        ),
        compiler_params=pltpu.CompilerParams(
            dimension_semantics=("parallel", "parallel"),
            vmem_limit_bytes=_VMEM_LIMIT),
    )(vw, idx)
    return _from_windows(out, k, Hp, Wp)


# ----------------------------------------------------------------------------
# log_softmax over the first `valid` columns of a lane-padded slab
# ----------------------------------------------------------------------------
def _log_softmax_kernel(x_ref, o_ref, *, valid):
    x = x_ref[...]
    col = jax.lax.broadcasted_iota(jnp.int32, x.shape, 1)
    xm = jnp.where(col < valid, x, -jnp.inf)
    m = jnp.max(xm, axis=-1, keepdims=True)
    lse = jnp.log(jnp.sum(jnp.exp(xm - m), axis=-1, keepdims=True))
    o_ref[...] = (x - m) - lse


def log_softmax_padded(x_pad, valid):
    out = pl.pallas_call(
        functools.partial(_log_softmax_kernel, valid=valid),
        out_shape=jax.ShapeDtypeStruct(x_pad.shape, jnp.float32),
        compiler_params=pltpu.CompilerParams(vmem_limit_bytes=_VMEM_LIMIT),
    )(x_pad.astype(jnp.float32))
    return out[:, :valid]


# ----------------------------------------------------------------------------
# Parameters (synthetic, deterministic)
# ----------------------------------------------------------------------------
CONV_DEFS = [
    # (name, cin, cout, is_transpose, bn applied to this conv's output)
    ("conv1", 3, 64, False, "bn1"),
    ("conv2", 64, 64, False, "bn2"),
    ("conv3", 64, 128, False, "bn3"),
    ("conv4", 128, 128, False, "bn3"),     # bn3 is reused after conv4 in the reference
    ("conv5", 128, 256, False, "bn5"),
    ("conv6", 256, 256, False, "bn6"),
    ("conv7", 256, 256, False, "bn7"),
    ("conv8", 256, 512, False, "bn8"),
    ("conv9", 512, 512, False, "bn9"),
    ("conv10", 512, 512, False, "bn10"),
    ("deconv10", 512, 512, True, "bn11"),
    ("deconv9", 512, 512, True, "bn12"),
    ("deconv8", 512, 256, True, "bn13"),
    ("deconv7", 256, 256, True, "bn14"),
    ("deconv6", 256, 256, True, "bn15"),
    ("deconv5", 256, 128, True, "bn16"),
    ("deconv4", 128, 128, True, "bn17"),
    ("deconv3", 128, 64, True, "bn18"),
    ("deconv2", 64, 64, True, "bn19"),
    ("deconv1", 64, 3, True, "bn20"),
]


def init_params(key):
    keys = iter(jax.random.split(key, 256))
    params = {}
    bn_cache = {}
    eps = 1e-5
    for name, cin, cout, is_t, bn in CONV_DEFS:
        std = 1.0 / np.sqrt(cin * 9)
        if is_t:
            # torch ConvTranspose2d weight (Cin, Cout, kH, kW); a stride-1 pad-1
            # transposed conv == conv with spatially flipped, in/out-swapped weights.
            wt = jax.random.normal(next(keys), (cin, cout, 3, 3), jnp.float32) * std
            w = jnp.transpose(wt[:, :, ::-1, ::-1], (2, 3, 0, 1))       # HWIO
        else:
            wt = jax.random.normal(next(keys), (cout, cin, 3, 3), jnp.float32) * std
            w = jnp.transpose(wt, (2, 3, 1, 0))                         # HWIO
        bias = jax.random.normal(next(keys), (cout,), jnp.float32) * std
        if bn not in bn_cache:
            gamma = 1.0 + 0.05 * jax.random.normal(next(keys), (cout,), jnp.float32)
            beta = 0.05 * jax.random.normal(next(keys), (cout,), jnp.float32)
            rmean = 0.05 * jax.random.normal(next(keys), (cout,), jnp.float32)
            rvar = 1.0 + 0.05 * jnp.abs(jax.random.normal(next(keys), (cout,), jnp.float32))
            bn_cache[bn] = (gamma, beta, rmean, rvar)
        gamma, beta, rmean, rvar = bn_cache[bn]
        scale = gamma / jnp.sqrt(rvar + eps)                # eval-mode BN
        shift = beta - rmean * scale
        params[name + "_w"] = w.reshape(9 * cin, cout).astype(jnp.bfloat16)
        params[name + "_scale"] = scale
        params[name + "_shift"] = scale * bias + shift      # conv bias folded into affine

    def fc_init(cin_real, cout_real, cin_pad=None, cout_pad=None):
        cin_pad = cin_pad if cin_pad is not None else cin_real
        cout_pad = cout_pad if cout_pad is not None else cout_real
        std = 1.0 / np.sqrt(cin_real)
        wt = jax.random.normal(next(keys), (cout_real, cin_real), jnp.float32) * std
        b = jax.random.normal(next(keys), (cout_real,), jnp.float32) * std
        w = jnp.zeros((cin_pad, cout_pad), jnp.float32).at[:cin_real, :cout_real].set(wt.T)
        bp = jnp.zeros((cout_pad,), jnp.float32).at[:cout_real].set(b)
        return w.astype(jnp.bfloat16), bp

    # fc2/fc3 padded 1000 -> 1024 (zeros) so the class axis is lane-dense.
    params["fc1_w"], params["fc1_b"] = fc_init(2048, 4096)
    params["fc2_w"], params["fc2_b"] = fc_init(4096, 1000, cout_pad=1024)
    params["fc3_w"], params["fc3_b"] = fc_init(1000, 4096, cin_pad=1024)
    params["fc4_w"], params["fc4_b"] = fc_init(4096, 2048)
    return params


# ----------------------------------------------------------------------------
# SWWAE forward
# ----------------------------------------------------------------------------
def swwae_forward(params, x_nchw):
    p = params
    B = x_nchw.shape[0]
    x = jnp.transpose(x_nchw, (0, 2, 3, 1))                   # NHWC (B,96,96,3)

    def cbn(t, name, relu=False, pool_k=None):
        return conv3x3_gemm(t, p[name + "_w"], p[name + "_scale"],
                            p[name + "_shift"], relu=relu, pool_k=pool_k,
                            out_dtype=jnp.bfloat16)

    def fcl(t, name, relu=False, out_dtype=jnp.bfloat16):
        n = p[name + "_b"].shape[0]
        return gemm_affine(t, p[name + "_w"], jnp.ones((n,), jnp.float32),
                           p[name + "_b"], relu=relu, out_dtype=out_dtype)

    # ---------------- encoder ----------------
    tw = cbn(x, "conv1", pool_k=4)                            # (B,576,16,64) windowed
    x1, idx1 = maxpool_relu_windowed(tw, 4, 24, 24)           # (B,24,24,64)
    t = cbn(x1, "conv2")                                      # (B,24,24,64)
    x2, idx2 = maxpool_relu_windowed(_to_windows(t, 3), 3, 8, 8)   # (B,8,8,64)
    t = cbn(x2, "conv3")
    t = cbn(t, "conv4")                                       # (B,8,8,128)
    x3, idx3 = maxpool_relu_windowed(_to_windows(t, 2), 2, 4, 4)   # (B,4,4,128)
    t = cbn(x3, "conv5")
    t = cbn(t, "conv6")
    t = cbn(t, "conv7")
    t = cbn(t, "conv8")
    t = cbn(t, "conv9")
    t = cbn(t, "conv10")                                      # (B,4,4,512)
    x4, idx4 = maxpool_relu_windowed(_to_windows(t, 2), 2, 2, 2)   # (B,2,2,512)

    # ---------------- bottleneck FCs ----------------
    flat = jnp.transpose(x4, (0, 3, 1, 2)).reshape(B, 512 * 2 * 2)  # torch .view (NCHW) order
    h = fcl(flat, "fc1", relu=True)                                 # dropout: identity (eval)
    x_nll_pad = fcl(h, "fc2", out_dtype=jnp.float32)                # (B,1024), cols 1000: pad
    h = fcl(x_nll_pad, "fc3")                                       # padded rows of fc3_w are 0
    h = fcl(h, "fc4", relu=True)                                    # (B,2048)
    d4 = jnp.transpose(h.reshape(B, 512, 2, 2), (0, 2, 3, 1))       # NHWC (B,2,2,512)

    # ---------------- decoder ----------------
    t = maxunpool(d4, idx4, 2)                # (B,4,4,512)
    t = cbn(t, "deconv10")
    t = cbn(t, "deconv9")
    t = cbn(t, "deconv8")
    t = cbn(t, "deconv7")
    t = cbn(t, "deconv6")
    t = cbn(t, "deconv5", relu=True)          # (B,4,4,128)
    t = maxunpool(t, idx3, 2)                 # (B,8,8,128)
    t = cbn(t, "deconv4")
    t = cbn(t, "deconv3", relu=True)          # (B,8,8,64)
    t = maxunpool(t, idx2, 3)                 # (B,24,24,64)
    t = cbn(t, "deconv2", relu=True)          # (B,24,24,64)
    t = maxunpool(t, idx1, 4)                 # (B,96,96,64)
    out = conv3x3_spatial(t, p["deconv1_w"], p["deconv1_scale"],
                          p["deconv1_shift"], relu=True)            # (B,96,96,3) f32

    output = jnp.transpose(out, (0, 3, 1, 2))                       # NCHW (B,3,96,96)
    logp = log_softmax_padded(x_nll_pad, 1000)                      # (B,1000), dim=1
    return output, logp


# ----------------------------------------------------------------------------
if __name__ == "__main__":
    key = jax.random.PRNGKey(0)
    pkey, xkey = jax.random.split(key)

    bf = jnp.bfloat16

    # ---- small structural spot-checks against XLA references (bf16-matched) ----
    xc = jax.random.normal(jax.random.PRNGKey(1), (2, 8, 8, 32), jnp.float32)
    wc = jax.random.normal(jax.random.PRNGKey(2), (3, 3, 32, 64), jnp.float32) * 0.1
    got = conv3x3_gemm(xc, wc.reshape(9 * 32, 64), jnp.ones((64,)), jnp.zeros((64,)),
                       out_dtype=jnp.float32)
    want = jax.lax.conv_general_dilated(
        xc.astype(bf).astype(jnp.float32), wc.astype(bf).astype(jnp.float32),
        (1, 1), "SAME", dimension_numbers=("NHWC", "HWIO", "NHWC"),
        precision=jax.lax.Precision.HIGHEST)
    assert jnp.allclose(got, want, atol=2e-2, rtol=2e-2), "conv-gemm kernel mismatch"

    xs = jax.random.normal(jax.random.PRNGKey(7), (2, 16, 16, 32), jnp.float32)
    ws = jax.random.normal(jax.random.PRNGKey(8), (3, 3, 32, 8), jnp.float32) * 0.1
    got_s = conv3x3_spatial(xs, ws.reshape(9 * 32, 8), jnp.ones((8,)), jnp.zeros((8,)))
    want_s = jax.lax.conv_general_dilated(
        xs.astype(bf).astype(jnp.float32), ws.astype(bf).astype(jnp.float32),
        (1, 1), "SAME", dimension_numbers=("NHWC", "HWIO", "NHWC"),
        precision=jax.lax.Precision.HIGHEST)
    assert jnp.allclose(got_s, want_s, atol=2e-2, rtol=2e-2), "spatial conv mismatch"

    pooled, pidx = maxpool_relu_windowed(_to_windows(xc, 2), 2, 4, 4)
    ref_pool = jnp.maximum(jnp.max(xc.reshape(2, 4, 2, 4, 2, 32), axis=(2, 4)), 0.0)
    assert jnp.allclose(pooled, ref_pool), "maxpool kernel mismatch"
    # unpool(pool(x)) must place each window max back where it came from
    unp = maxunpool(pooled, pidx, 2)
    ref_unp = jnp.where(
        jnp.max(xc.reshape(2, 4, 2, 4, 2, 32), axis=(2, 4), keepdims=True)
        == xc.reshape(2, 4, 2, 4, 2, 32),
        ref_pool[:, :, None, :, None, :], 0.0).reshape(2, 8, 8, 32)
    assert jnp.allclose(unp, ref_unp), "maxunpool kernel mismatch"

    xf = jax.random.normal(jax.random.PRNGKey(3), (2, 1024), jnp.float32)
    wf = jax.random.normal(jax.random.PRNGKey(4), (1024, 512), jnp.float32) * 0.03
    bfc = jax.random.normal(jax.random.PRNGKey(5), (512,), jnp.float32)
    got_fc = gemm_affine(xf, wf, jnp.ones((512,)), bfc, out_dtype=jnp.float32)
    want_fc = (xf.astype(bf).astype(jnp.float32) @ wf.astype(bf).astype(jnp.float32)) + bfc
    assert jnp.allclose(got_fc, want_fc, atol=2e-2, rtol=2e-2), "fc kernel mismatch"

    # ---- full SWWAE forward ----
    params = init_params(pkey)
    # Input must be 96x96 so the bottleneck .view(-1, 512*2*2) is valid
    # (96 /4 /3 /2 /2 = 2), matching the PyTorch module.
    x = jax.random.normal(xkey, (2, 3, 96, 96), jnp.float32)

    fwd = jax.jit(functools.partial(swwae_forward, params))
    output, logp = fwd(x)
    jax.block_until_ready((output, logp))

    assert output.shape == (2, 3, 96, 96) and output.dtype == jnp.float32
    assert logp.shape == (2, 1000) and logp.dtype == jnp.float32
    assert bool(jnp.all(jnp.isfinite(output))) and bool(jnp.all(jnp.isfinite(logp)))
    assert bool(jnp.allclose(jnp.sum(jnp.exp(logp), axis=-1), 1.0, atol=1e-3))
    assert bool(jnp.all(output >= 0.0))   # final ReLU

    print("KERNEL_OK")
</pallas_src>

<mosaic_0001>
module attributes {stable_mosaic.version = 11 : i64} {
  func.func @_gemm_affine_kernel(%arg0: i32, %arg1: i32, %arg2: memref<64x288xbf16, #tpu.memory_space<vmem>>, %arg3: memref<288x64xbf16, #tpu.memory_space<vmem>>, %arg4: memref<1x64xf32, #tpu.memory_space<vmem>>, %arg5: memref<1x64xf32, #tpu.memory_space<vmem>>, %arg6: memref<64x64xf32, #tpu.memory_space<vmem>>) attributes {dimension_semantics = [#tpu.dimension_semantics<parallel>, #tpu.dimension_semantics<parallel>], iteration_bounds = array<i64: 2, 1>, scalar_prefetch = 0 : i64, scratch_operands = 0 : i64, tpu.core_type = #tpu.core_type<tc>, window_params = [{transform_indices = @transform_0, window_bounds = array<i64: 64, 288>}, {transform_indices = @transform_1, window_bounds = array<i64: 288, 64>}, {transform_indices = @transform_2, window_bounds = array<i64: 1, 64>}, {transform_indices = @transform_3, window_bounds = array<i64: 1, 64>}, {transform_indices = @transform_4, window_bounds = array<i64: 64, 64>}]} {
    %c0 = arith.constant 0 : index
    %c0_0 = arith.constant 0 : index
    %0 = vector.load %arg2[%c0, %c0_0] : memref<64x288xbf16, #tpu.memory_space<vmem>>, vector<64x288xbf16>
    %c0_1 = arith.constant 0 : index
    %c0_2 = arith.constant 0 : index
    %1 = vector.load %arg3[%c0_1, %c0_2] : memref<288x64xbf16, #tpu.memory_space<vmem>>, vector<288x64xbf16>
    %cst = arith.constant dense<0.000000e+00> : vector<64x64xf32>
    %2 = tpu.matmul %0, %1, %cst {dimension_numbers = #tpu.dot_dimension_numbers<[1], [0], [0], [1], [0, 0, 1, 1], [], []>} : vector<64x288xbf16>, vector<288x64xbf16>, vector<64x64xf32> -> vector<64x64xf32>
    %c0_3 = arith.constant 0 : index
    %c0_4 = arith.constant 0 : index
    %3 = vector.load %arg4[%c0_3, %c0_4] : memref<1x64xf32, #tpu.memory_space<vmem>>, vector<1x64xf32>
    %4 = vector.broadcast %3 : vector<1x64xf32> to vector<64x64xf32>
    %5 = arith.mulf %2, %4 : vector<64x64xf32>
    %c0_5 = arith.constant 0 : index
    %c0_6 = arith.constant 0 : index
    %6 = vector.load %arg5[%c0_5, %c0_6] : memref<1x64xf32, #tpu.memory_space<vmem>>, vector<1x64xf32>
    %7 = vector.broadcast %6 : vector<1x64xf32> to vector<64x64xf32>
    %8 = arith.addf %5, %7 : vector<64x64xf32>
    %c0_7 = arith.constant 0 : index
    %c0_8 = arith.constant 0 : index
    %9 = vector.load %arg6[%c0_7, %c0_8] : memref<64x64xf32, #tpu.memory_space<vmem>>, vector<64x64xf32>
    tpu.vector_store %arg6[%c0_7, %c0_8], %8 {strides = array<i32>} : memref<64x64xf32, #tpu.memory_space<vmem>>, vector<64x64xf32>,
    return
  }
  func.func @transform_0(%arg0: i32, %arg1: i32) -> (i32, i32) {
    %c0_i32 = arith.constant 0 : i32
    %c0_i32_0 = arith.constant 0 : i32
    return %arg0, %c0_i32 : i32, i32
  }
  func.func @transform_1(%arg0: i32, %arg1: i32) -> (i32, i32) {
    %c0_i32 = arith.constant 0 : i32
    %c0_i32_0 = arith.constant 0 : i32
    return %c0_i32, %arg1 : i32, i32
  }
  func.func @transform_2(%arg0: i32, %arg1: i32) -> (i32, i32) {
    %c0_i32 = arith.constant 0 : i32
    %c0_i32_0 = arith.constant 0 : i32
    return %c0_i32, %arg1 : i32, i32
  }
  func.func @transform_3(%arg0: i32, %arg1: i32) -> (i32, i32) {
    %c0_i32 = arith.constant 0 : i32
    %c0_i32_0 = arith.constant 0 : i32
    return %c0_i32, %arg1 : i32, i32
  }
  func.func @transform_4(%arg0: i32, %arg1: i32) -> (i32, i32) {
    %c0_i32 = arith.constant 0 : i32
    return %arg0, %arg1 : i32, i32
  }
}

</mosaic_0001>

<bundles_post_ra>
// kernel: tpu_custom_call.1
= control target key start
LH: loop header
LB: loop body
LE: loop exit
PB: predicated region body
PF: predicated region fallthrough
CT: control target
= control target key end

     0   :  { %s1018_s15 = smov 0   ;;  %s1020_s16 = smov 0   ;;  %s1151_s0 = inlined_call_operand.vmem [shape: bf16[128,288], index: 0, kind: input, shape index: {}]   ;;  %s1152_s1 = inlined_call_operand.vmem [shape: bf16[288,64], index: 1, kind: input, shape index: {}]   ;;  %s1153_s2 = inlined_call_operand.vmem [shape: f32[1,64], index: 2, kind: input, shape index: {}]   ;;  %s1154_s3 = inlined_call_operand.vmem [shape: f32[1,64], index: 3, kind: input, shape index: {}]   ;;  %s1155_s4 = inlined_call_operand.vmem [shape: f32[128,64], index: 4, kind: output, shape index: {}]  }
   0x1   :  { %s1022_s17 = smov 0  }
   0x2 LB: > { %s26_s18 = sadd.s32 1, %s987_s16  ;;  %p793_p0 = scmp.ge.s32.totalorder %s991_s17, 1  ;;  %s991_s17 = sphi %s1022_s17, %s14_s17   ;;  %s987_s16 = sphi %s1020_s16, %s1157_s16   ;;  %s983_s15 = sphi %s1018_s15, %s1156_s15  }
   0x3   : > { %p28_p1 = scmp.ge.s32.totalorder %s26_s18, 2  ;;  %p203_p2 = scmp.lt.s32.totalorder %s991_s17, 3 }
   0x5   : > { %s1159_s18 = smov (%p28_p1, %s26_s18), 0  ;;  %p204_p3 = pnand %p793_p0, %p203_p2 }
   0x6   : > { %s794_s21 = sshll.u32 (!%p204_p3), %s983_s15, 3 }
   0x7   : > { %207 = sbr.rel (%p204_p3) target bundleno = 269 (0x10d), region = 36  ;;  %p244_p4 = scmp.lt.s32.totalorder (!%p204_p3), %s794_s21, 15 }
   0xc   : > { %v935_v0 = vld [vmem:[%s1152_s1 + $0x78] sm:$0xff]   ;;  %v937_v2 = vld [vmem:[%s1152_s1 + $0x70] sm:$0xff]   ;;  %v939_v4 = vld [vmem:[%s1152_s1 + $0x68] sm:$0xff]   ;;  %s1161_s21 = smov (!%p244_p4, %s794_s21), 15  ;;  %vm490_vm0 = vcmask 261120   ;;  %vm663_vm1 = vcmask 523264  }
   0xd   : > { %v936_v1 = vld [vmem:[%s1152_s1 + $0x38] sm:$0xff]   ;;  %836 = vmatprep.subr.bf16.mxu0 %v935_v0  ;;  %894 = vmatprep.subr.bf16.mxu1 %v935_v0  ;;  %v938_v3 = vld [vmem:[%s1152_s1 + $0x30] sm:$0xff]   ;;  %v940_v5 = vld [vmem:[%s1152_s1 + $0x28] sm:$0xff]   ;;  %s910_s8 = smul.u32 12, %s1161_s21  ;;  %s797_s14 = sshll.u32 %s1161_s21, 3 }
   0xe   : > { %837 = vmatpush3.bf16.msra.mxu0 %v936_v1  ;;  %902 = vmatpush3.bf16.msra.mxu1 %v936_v1  ;;  %v941_v6 = vld [vmem:[%s1152_s1 + $0x60] sm:$0xff]   ;;  %v943_v8 = vld [vmem:[%s1152_s1 + $0x58] sm:$0xff]   ;;  %v945_v10 = vld [vmem:[%s1152_s1 + $0x50] sm:$0xff]   ;;  %s1124_s23 = scalar_lea.vmem %s1155_s4, %s797_s14 }
   0xf   : > { %838 = vmatprep.subr.bf16.mxu0 %v937_v2  ;;  %895 = vmatprep.subr.bf16.mxu1 %v937_v2  ;;  %v942_v7 = vld [vmem:[%s1152_s1 + $0x20] sm:$0xff]   ;;  %s1069_s15 = scalar_lea.vmem %s1151_s0, %s910_s8  ;;  %v944_v9 = vld [vmem:[%s1152_s1 + $0x18] sm:$0xff]   ;;  %v946_v13 = vld [vmem:[%s1152_s1 + $0x10] sm:$0xff]  }
  0x10   : > { %v953_v11 = vld [vmem:[%s1069_s15 + $0x4] ss:$12 sps:$4 sm:$0xff]   ;;  %v956_v12 = vld [vmem:[%s1069_s15 + $0x4c] ss:$12 sps:$4 sm:$0xff]   ;;  %v954_v20 = vld [vmem:[%s1069_s15 + $0x48] ss:$12 sps:$4 sm:$0xff]  }
  0x11   : > { %v947_v14 = vld [vmem:[%s1152_s1 + $0x48] sm:$0xff]   ;;  %535 = vmatprep.mubr.bf16.mxu0 %v953_v11  ;;  %559 = vmatprep.mubr.bf16.mxu1 %v956_v12  ;;  %v949_v16 = vld [vmem:[%s1152_s1 + $0x40] sm:$0xff]   ;;  %v967_v28 = vld [vmem:[%s1069_s15 + $0x30] ss:$12 sps:$4 sm:$0xff]  }
  0x12   : > { %839 = vmatpush3.bf16.msra.mxu0 %v938_v3  ;;  %903 = vmatpush3.bf16.msra.mxu1 %v938_v3  ;;  %v948_v15 = vld [vmem:[%s1152_s1 + $0x8] sm:$0xff]   ;;  %v950_v17 = vld [vmem:[%s1152_s1] sm:$0xff]   ;;  %v968_v29 = vld [vmem:[%s1069_s15 + $0x50] ss:$12 sps:$4 sm:$0xff]  }
  0x13   : > { %840 = vmatprep.subr.bf16.mxu0 %v939_v4  ;;  %896 = vmatprep.subr.bf16.mxu1 %v939_v4  ;;  %v957_v18 = vld [vmem:[%s1152_s1 + $0x88] sm:$0xff]   ;;  %v958_v22 = vld [vmem:[%s1152_s1 + $0x80] sm:$0xff]  }
  0x14   : > { %v951_v19 = vld [vmem:[%s1069_s15] ss:$12 sps:$4 sm:$0xff]   ;;  %v959_v21 = vld [vmem:[%s1069_s15 + $0x1c] ss:$12 sps:$4 sm:$0xff]   ;;  %v962_v24 = vld [vmem:[%s1069_s15 + $0x18] ss:$12 sps:$4 sm:$0xff]  }
  0x15   : > { %v961_v23 = vld [vmem:[%s1069_s15 + $0x8] ss:$12 sps:$4 sm:$0xff]   ;;  %v963_v25 = vld [vmem:[%s1069_s15 + $0x20] ss:$12 sps:$4 sm:$0xff]   ;;  %v966_v27 = vld [vmem:[%s1069_s15 + $0x38] ss:$12 sps:$4 sm:$0xff]  }
  0x16   : > { %841 = vmatpush3.bf16.msra.mxu0 %v940_v5  ;;  %904 = vmatpush3.bf16.msra.mxu1 %v940_v5  ;;  %v964_v26 = vld [vmem:[%s1069_s15 + $0x34] ss:$12 sps:$4 sm:$0xff]  }
  0x17   : > { %842 = vmatprep.subr.bf16.mxu0 %v941_v6  ;;  %897 = vmatprep.subr.bf16.mxu1 %v941_v6  ;;  %v832_v42 = vld [vmem:[%s1153_s2] ss:$0 sm:$0xff] }
  0x18   : > { %v833_v46 = vld [vmem:[%s1154_s3] ss:$0 sm:$0xff] }
  0x1a   : > { %843 = vmatpush3.bf16.msra.mxu0 %v942_v7  ;;  %905 = vmatpush3.bf16.msra.mxu1 %v942_v7 }
  0x1b   : > { %844 = vmatprep.subr.bf16.mxu0 %v943_v8  ;;  %898 = vmatprep.subr.bf16.mxu1 %v943_v8 }
  0x1e   : > { %845 = vmatpush3.bf16.msra.mxu0 %v944_v9  ;;  %906 = vmatpush3.bf16.msra.mxu1 %v944_v9 }
  0x1f   : > { %846 = vmatprep.subr.bf16.mxu0 %v945_v10  ;;  %899 = vmatprep.subr.bf16.mxu1 %v945_v10 }
  0x22   : > { %847 = vmatpush3.bf16.msra.mxu0 %v946_v13  ;;  %907 = vmatpush3.bf16.msra.mxu1 %v946_v13 }
  0x23   : > { %848 = vmatprep.subr.bf16.mxu0 %v947_v14  ;;  %900 = vmatprep.subr.bf16.mxu1 %v947_v14 }
  0x26   : > { %849 = vmatpush3.bf16.msra.mxu0 %v948_v15  ;;  %908 = vmatpush3.bf16.msra.mxu1 %v948_v15 }
  0x27   : > { %850 = vmatprep.subr.bf16.mxu0 %v949_v16  ;;  %901 = vmatprep.subr.bf16.mxu1 %v949_v16 }
  0x2a   : > { %851 = vmatpush3.bf16.msra.mxu0 %v950_v17  ;;  %909 = vmatpush3.bf16.msra.mxu1 %v950_v17 }
  0x2b   : > { %882 = vmatprep.subr.bf16.mxu1 %v957_v18 }
  0x2d   : > { %536 = vmatmul.mubr.bf16.vlgmr.msra.gmra.mxu0 %v951_v19  ;;  %560 = vmatmul.mubr.bf16.vlgmr.msra.gmra.mxu1 %v954_v20 }
  0x2e   : > { %883 = vmatpush3.bf16.msra.mxu1 %v957_v18  ;;  %543 = vmatprep.mubr.bf16.mxu0 %v959_v21 }
  0x2f   : > { %884 = vmatprep.subr.bf16.mxu1 %v958_v22  ;;  %886 = vmatprep.mubr.msk.bf16.mxu1 %vm490_vm0, %v961_v23 }
  0x32   : > { %885 = vmatpush3.bf16.msra.mxu1 %v958_v22 }
  0x35   : > { %544 = vmatmul.mubr.bf16.gmra.mxu0 %v962_v24  ;;  %887 = vmatmul.mubr.msk.bf16.vlgmr.msra.gmra.mxu1 %vm490_vm0, %v963_v25 }
  0x36   : > { %551 = vmatprep.mubr.bf16.mxu0 %v964_v26  ;;  %890 = vmatprep.mubr.msk.bf16.mxu1 %vm490_vm0, %v966_v27 }
  0x3d   : > { %552 = vmatmul.mubr.bf16.gmra.mxu0 %v967_v28  ;;  %891 = vmatmul.mubr.msk.bf16.gmra.mxu1 %vm490_vm0, %v968_v29 }
  0xed   : > { %v852_v30 = vpop.f32.mrf.mxu0  ;;  %v870_v31 = vpop.f32.mrf.mxu1 }
  0xef   : > { %v853_v32 = vpop.f32.mrf.mxu0  ;;  %v871_v33 = vpop.f32.mrf.mxu1 }
  0xf0   : > { %v854_v40 = vadd.f32 %v853_v32, %v852_v30  ;;  %v872_v52 = vadd.f32 %v871_v33, %v870_v31 }
  0xf1   : > { %v855_v34 = vpop.f32.mrf.mxu0  ;;  %v873_v35 = vpop.f32.mrf.mxu1 }
  0xf3   : > { %v856_v36 = vpop.f32.mrf.mxu0  ;;  %v874_v37 = vpop.f32.mrf.mxu1 }
  0xf4   : > { %v857_v49 = vadd.f32 %v856_v36, %v855_v34  ;;  %v875_v1 = vadd.f32 %v874_v37, %v873_v35 }
  0xf5   : > { %v858_v38 = vpop.f32.mrf.mxu0  ;;  %v888_v39 = vpop.f32.mrf.mxu1 }
  0xf7   : > { %v859_v41 = vpop.f32.mrf.mxu0  ;;  %v602_v43 = vpop.f32.mrf.mxu1 }
  0xf8   : > { %v860_v44 = vadd.f32 %v859_v41, %v858_v38  ;;  %v603_v45 = vadd.f32 %v854_v40, %v602_v43 }
  0xf9   : > { %v861_v47 = vpop.f32.mrf.mxu0  ;;  %v889_v48 = vpop.f32.mrf.mxu1 }
  0xfa   : > { %v611_v50 = vadd.f32 %v888_v39, %v860_v44  ;;  %v640_v51 = vmul.f32 %v832_v42, %v603_v45 }
  0xfb   : > { %v862_v53 = vpop.f32.mrf.mxu0  ;;  %v605_v54 = vpop.f32.mrf.mxu1 }
  0xfc   : > { %v642_v55 = vmul.f32 %v832_v42, %v611_v50  ;;  %v655_v56 = vadd.f32 %v833_v46, %v640_v51  ;;  %v863_v57 = vadd.f32 %v862_v53, %v861_v47  ;;  %v606_v58 = vadd.f32 %v857_v49, %v605_v54 }
  0xfd   : > { %v864_v59 = vpop.f32.mrf.mxu0  ;;  %v892_v60 = vpop.f32.mrf.mxu1 }
  0xfe   : > { %v657_v61 = vadd.f32 %v833_v46, %v642_v55  ;;  %664 = vst.msk [vmem:[%s1124_s23] sm:$0xff] %vm663_vm1, %v655_v56  ;;  %v614_v62 = vadd.f32 %v889_v48, %v863_v57  ;;  %v641_v63 = vmul.f32 %v832_v42, %v606_v58  ;;  %v627_v0 = vadd.f32 %v892_v60, %v872_v52 }
  0xff   : > { %v865_v2 = vpop.f32.mrf.mxu0  ;;  %v618_v3 = vpop.f32.mrf.mxu1 }
 0x100   : > { %666 = vst.msk [vmem:[%s1124_s23 + $0x10] sm:$0xff] %vm663_vm1, %v657_v61  ;;  %v643_v4 = vmul.f32 %v832_v42, %v614_v62  ;;  %v656_v5 = vadd.f32 %v833_v46, %v641_v63  ;;  %v646_v6 = vmul.f32 %v832_v42, %v627_v0  ;;  %v866_v7 = vadd.f32 %v865_v2, %v864_v59 }
 0x101   : > { %v867_v8 = vpop.f32.mrf.mxu0  ;;  %v893_v9 = vpop.f32.mrf.mxu1 }
 0x102   : > { %v658_v10 = vadd.f32 %v833_v46, %v643_v4  ;;  %665 = vst.msk [vmem:[%s1124_s23 + $0x8] sm:$0xff] %vm663_vm1, %v656_v5  ;;  %v661_v11 = vadd.f32 %v833_v46, %v646_v6  ;;  %v619_v12 = vadd.f32 %v866_v7, %v618_v3  ;;  %v630_v13 = vadd.f32 %v893_v9, %v875_v1 }
 0x103   : > { %v868_v14 = vpop.f32.mrf.mxu0  ;;  %v621_v18 = vpop.f32.mrf.mxu1 }
 0x104   : > { %667 = vst.msk [vmem:[%s1124_s23 + $0x18] sm:$0xff] %vm663_vm1, %v658_v10  ;;  %670 = vst.msk [vmem:[%s1124_s23 + $0x30] sm:$0xff] %vm663_vm1, %v661_v11  ;;  %v644_v15 = vmul.f32 %v832_v42, %v619_v12  ;;  %v647_v16 = vmul.f32 %v832_v42, %v630_v13  ;;  %v869_v17 = vadd.f32 %v868_v14, %v867_v8 }
 0x106   : > { %v659_v19 = vadd.f32 %v833_v46, %v644_v15  ;;  %v662_v20 = vadd.f32 %v833_v46, %v647_v16  ;;  %v622_v21 = vadd.f32 %v869_v17, %v621_v18 }
 0x108   : > { %668 = vst.msk [vmem:[%s1124_s23 + $0x20] sm:$0xff] %vm663_vm1, %v659_v19  ;;  %671 = vst.msk [vmem:[%s1124_s23 + $0x38] sm:$0xff] %vm663_vm1, %v662_v20  ;;  %v645_v22 = vmul.f32 %v832_v42, %v622_v21 }
 0x10a   : > { %v660_v23 = vadd.f32 %v833_v46, %v645_v22 }
 0x10c   : > { %669 = vst.msk [vmem:[%s1124_s23 + $0x28] sm:$0xff] %vm663_vm1, %v660_v23 }
 0x10d PF: > { %s14_s17 = sadd.s32 1, %s991_s17   ;;  %s1156_s15 = smov %s987_s16 }
 0x10e   : > { %p11_p5 = scmp.ge.s32.totalorder %s14_s17, 4   ;;  %s1157_s16 = smov %s1159_s18 }
 0x110   :  { %13 = sbr.rel (!%p11_p5) target bundleno = 2 (0x2), region = 75 }

</bundles_post_ra>
